<compile_context>
chip_gen: v7x
topology: tpu7x:2x2x1
jax: 0.10.0
libtpu: 0.0.40
codegen_flags: <defaults>
</compile_context>

<pallas_src>
import jax
import jax.numpy as jnp
from jax.experimental import pallas as pl
from jax.experimental.pallas import tpu as pltpu


# ----------------------------- Pallas kernel --------------------------------
def tlstm3_seq_kernel(
    x_ref,      # (1, B, D)   input for the current step (streamed)
    t_ref,      # (1, B, 1)   elapsed time for the current step (streamed)
    h0_ref,     # (B, H)      initial hidden state (resident)
    c0_ref,     # (B, H)      initial cell state (resident)
    wx_ref,     # (D, GP)     W_all.weight^T, gate-strided to lane tiles (resident)
    uh_ref,     # (H, GP)     U_all.weight^T, gate-strided to lane tiles (resident)
    ps_ref,     # (8, GP)     row 0: fused gate bias; 1/2: wt1/wt2 rows; 3/4: fused t-biases
    tcol_ref,   # (H, 2)      [W_t1.weight | W_t2.weight] as columns (B == H)
    wto_ref,    # (H, H)      W_to.weight
    newh_ref,   # (1, B, H)   output new_h for this step
    ctil_ref,   # (1, B, H)   output c_tilde for this step
    h_scr,      # (B, H) VMEM scratch: carried hidden state
    c_scr,      # (B, H) VMEM scratch: carried cell state
):
    H = h_scr.shape[1]
    HP = wx_ref.shape[1] // 3          # lane-tile-aligned gate stride

    # Seed the recurrent state from the user-provided h0/c0 on the first step.
    @pl.when(pl.program_id(0) == 0)
    def _():
        h_scr[...] = h0_ref[...]
        c_scr[...] = c0_ref[...]

    x = x_ref[0]                       # (B, D)
    t = t_ref[0]                       # (B, 1)
    h = h_scr[...]
    c = c_scr[...]

    # Gate pre-activations: two MXU pushes into one lane-dense (B, GP) result
    # with tile-aligned gate sections (i at lane 0, o at HP, c at 2*HP).
    gates = (jnp.dot(x, wx_ref[...], preferred_element_type=jnp.float32)
             + jnp.dot(h, uh_ref[...], preferred_element_type=jnp.float32))

    i_pre = gates[:, 0:H]               + ps_ref[0:1, 0:H]
    o_pre = gates[:, HP:HP + H]         + ps_ref[0:1, HP:HP + H]
    c_pre = gates[:, 2 * HP:2 * HP + H] + ps_ref[0:1, 2 * HP:2 * HP + H]

    # Time gates (exact B == H broadcasting semantics of the PyTorch module).
    t_b = jnp.broadcast_to(t, (t.shape[0], H))       # hoisted lane-broadcast of t
    col_t = tcol_ref[...] * t                        # (B, 2): [wt1_col*t | wt2_col*t]
    T1 = jax.nn.sigmoid(t_b * ps_ref[1:2, 0:H] + col_t[:, 0:1] + ps_ref[3:4, 0:H])
    T2 = jax.nn.sigmoid(t_b * ps_ref[2:3, 0:H] + col_t[:, 1:2] + ps_ref[4:5, 0:H])

    i = jax.nn.sigmoid(i_pre)
    o = jax.nn.sigmoid(o_pre + t_b * wto_ref[...])
    c_tmp = jnp.tanh(c_pre)

    iT1 = i * T1
    cell = (1.0 - iT1) * c + iT1 * c_tmp
    c_tilde = (1.0 - i) * c + i * T2 * c_tmp
    new_h = o * jnp.tanh(cell)

    newh_ref[0] = new_h
    ctil_ref[0] = c_tilde

    # Carry the module's two return values (new_h, c_tilde) as next step's (h, c).
    h_scr[...] = new_h
    c_scr[...] = c_tilde


# ------------------------------- wrappers ------------------------------------
@jax.jit
def tlstm3_sequence(h0, c0, xs, ts, kp):
    """Apply TLSTM3_Unit.forward for T steps inside one pallas_call.

    xs: (T, B, D), ts: (T, B, 1), h0/c0: (B, H).  Returns (new_h, c_tilde) each
    of shape (T, B, H) — step s is exactly the module forward applied to the
    state carried from step s-1.
    """
    T, B, D = xs.shape
    H = h0.shape[1]
    assert B == H, "original PyTorch broadcasting requires batch == hidden_dim"
    GP = kp["wx"].shape[1]

    grid_spec = pltpu.PrefetchScalarGridSpec(
        num_scalar_prefetch=0,
        grid=(T,),
        in_specs=[
            pl.BlockSpec((1, B, D), lambda s: (s, 0, 0)),   # x   (streamed)
            pl.BlockSpec((1, B, 1), lambda s: (s, 0, 0)),   # t   (streamed)
            pl.BlockSpec((B, H),    lambda s: (0, 0)),      # h0  (resident)
            pl.BlockSpec((B, H),    lambda s: (0, 0)),      # c0  (resident)
            pl.BlockSpec((D, GP),   lambda s: (0, 0)),      # wx  (resident)
            pl.BlockSpec((H, GP),   lambda s: (0, 0)),      # uh  (resident)
            pl.BlockSpec((8, GP),   lambda s: (0, 0)),      # param slab (resident)
            pl.BlockSpec((H, 2),    lambda s: (0, 0)),      # tcol (resident)
            pl.BlockSpec((H, H),    lambda s: (0, 0)),      # w_to (resident)
        ],
        out_specs=(
            pl.BlockSpec((1, B, H), lambda s: (s, 0, 0)),   # new_h per step
            pl.BlockSpec((1, B, H), lambda s: (s, 0, 0)),   # c_tilde per step
        ),
        scratch_shapes=[
            pltpu.VMEM((B, H), jnp.float32),                # carried h
            pltpu.VMEM((B, H), jnp.float32),                # carried c
        ],
    )

    new_h, c_tilde = pl.pallas_call(
        tlstm3_seq_kernel,
        out_shape=(jax.ShapeDtypeStruct((T, B, H), jnp.float32),
                   jax.ShapeDtypeStruct((T, B, H), jnp.float32)),
        grid_spec=grid_spec,
        compiler_params=pltpu.CompilerParams(
            dimension_semantics=("arbitrary",)),            # sequential carry
    )(xs, ts, h0, c0, kp["wx"], kp["uh"], kp["pslab"], kp["tcol"], kp["w_to"])
    return new_h, c_tilde


def tlstm3_unit(h, c, x, t, kp):
    """Single-step forward, matching TLSTM3_Unit.forward(h, c, x, t)."""
    new_h, c_tilde = tlstm3_sequence(h, c, x[None], t[None], kp)
    return new_h[0], c_tilde[0]


# ---------------------- deterministic parameter setup ------------------------
def init_raw_params(key, input_dim, hidden_dim):
    """Mimics the nn.Module __init__ (PyTorch-style uniform Linear init)."""
    D, H = input_dim, hidden_dim
    ks = jax.random.split(key, 11)

    def lin(kw, kb, fan_in, out):
        bound = 1.0 / float(fan_in) ** 0.5
        w = jax.random.uniform(kw, (out, fan_in), jnp.float32, -bound, bound)
        b = jax.random.uniform(kb, (out,), jnp.float32, -bound, bound)
        return w, b

    W_all_w, W_all_b = lin(ks[0], ks[1], D, 3 * H)
    U_all_w, U_all_b = lin(ks[2], ks[3], H, 3 * H)
    _, W_t1_b = lin(ks[4], ks[5], 1, H)
    W_t1_w = jax.random.uniform(ks[6], (H, 1), jnp.float32, -1.0, 0.0)  # .uniform_(-1, 0)
    W_t2_w, W_t2_b = lin(ks[7], ks[8], 1, H)
    W_to_w, _W_to_b = lin(ks[9], ks[10], H, H)   # W_to bias is unused in forward
    zeros = jnp.zeros((H,), jnp.float32)
    return dict(
        W_all_w=W_all_w, W_all_b=W_all_b,
        U_all_w=U_all_w, U_all_b=U_all_b,
        W_t1_w=W_t1_w, W_t1_b=W_t1_b,
        W_t2_w=W_t2_w, W_t2_b=W_t2_b,
        W_to_w=W_to_w,
        b_t1=zeros, b_t2=zeros, b_i=zeros, b_o=zeros, b_c=zeros,
    )


def prep_kernel_params(p, input_dim, hidden_dim):
    """Fuse/pad parameters for the kernel.

    Gates are strided by HP = round_up(H, 128) lanes so every in-kernel gate
    slice starts on a (8,128) tile boundary.
    """
    D, H = input_dim, hidden_dim
    HP = ((H + 127) // 128) * 128
    GP = 3 * HP

    def stride_gates(w_t):               # (rows, 3H) -> (rows, GP), tile-aligned gates
        rows = w_t.shape[0]
        out = jnp.zeros((rows, GP), jnp.float32)
        for g in range(3):
            out = out.at[:, g * HP:g * HP + H].set(w_t[:, g * H:(g + 1) * H])
        return out

    wx = stride_gates(p["W_all_w"].T)                                    # (D, GP)
    uh = stride_gates(p["U_all_w"].T)                                    # (H, GP)

    gate_bias = jnp.concatenate([p["b_i"], p["b_o"], p["b_c"]])
    bias = stride_gates(
        (p["W_all_b"] + p["U_all_b"] + gate_bias).reshape(1, 3 * H))     # (1, GP)

    # Small-parameter slab (one operand / one DMA descriptor):
    #   row 0: fused gate bias   row 1: wt1 row   row 2: wt2 row
    #   row 3: W_t1_b + b_t1     row 4: W_t2_b + b_t2
    pslab = jnp.zeros((8, GP), jnp.float32)
    pslab = pslab.at[0, :].set(bias[0])
    pslab = pslab.at[1, :H].set(p["W_t1_w"][:, 0])
    pslab = pslab.at[2, :H].set(p["W_t2_w"][:, 0])
    pslab = pslab.at[3, :H].set(p["W_t1_b"] + p["b_t1"])
    pslab = pslab.at[4, :H].set(p["W_t2_b"] + p["b_t2"])

    tcol = jnp.concatenate([p["W_t1_w"], p["W_t2_w"]], axis=1)           # (H, 2)

    return dict(wx=wx, uh=uh, pslab=pslab, tcol=tcol, w_to=p["W_to_w"])


# --------------------- pure-JAX reference (torch transcription) --------------
def reference_step(p, h, c, x, t):
    H = p["b_i"].shape[0]
    sig = jax.nn.sigmoid
    T1 = sig(t @ p["W_t1_w"].T + p["W_t1_b"] + p["W_t1_w"] * t + p["b_t1"])
    T2 = sig(t @ p["W_t2_w"].T + p["W_t2_b"] + p["W_t2_w"] * t + p["b_t2"])
    outs = x @ p["W_all_w"].T + p["W_all_b"] + h @ p["U_all_w"].T + p["U_all_b"]
    i, o, c_tmp = outs[:, :H], outs[:, H:2 * H], outs[:, 2 * H:]
    i = sig(i + p["b_i"])
    o = sig(o + t * p["W_to_w"] + p["b_o"])
    c_tmp = jnp.tanh(c_tmp + p["b_c"])
    cell = (1 - i * T1) * c + i * T1 * c_tmp
    c_tilde = (1 - i) * c + i * T2 * c_tmp
    new_h = o * jnp.tanh(cell)
    return new_h, c_tilde


def reference_sequence(p, h0, c0, xs, ts):
    h, c = h0, c0
    hs, cs = [], []
    for s in range(xs.shape[0]):
        h, c = reference_step(p, h, c, xs[s], ts[s])
        hs.append(h)
        cs.append(c)
    return jnp.stack(hs), jnp.stack(cs)


# ---------------------------------- main --------------------------------------
if __name__ == "__main__":
    D, H = 16, 32
    B = H      # required by the original module's (H,1)*(B,1) broadcasting
    T = 8      # timesteps fused into one pallas_call

    key = jax.random.PRNGKey(0)
    kp_key, kx, kh, kc, kt = jax.random.split(key, 5)

    raw = init_raw_params(kp_key, D, H)
    kparams = prep_kernel_params(raw, D, H)

    xs = jax.random.normal(kx, (T, B, D), jnp.float32)
    h0 = jax.random.normal(kh, (B, H), jnp.float32)
    c0 = jax.random.normal(kc, (B, H), jnp.float32)
    ts = jax.random.uniform(kt, (T, B, 1), jnp.float32)

    # --- single-step check: matches TLSTM3_Unit.forward exactly ---
    new_h1, c_til1 = tlstm3_unit(h0, c0, xs[0], ts[0], kparams)
    jax.block_until_ready((new_h1, c_til1))
    ref_h1, ref_c1 = reference_step(raw, h0, c0, xs[0], ts[0])
    assert jnp.allclose(new_h1, ref_h1, atol=1e-5, rtol=1e-5), "single-step new_h mismatch"
    assert jnp.allclose(c_til1, ref_c1, atol=1e-5, rtol=1e-5), "single-step c_tilde mismatch"

    # --- fused-sequence check: T repeated applications inside one kernel ---
    seq_h, seq_c = tlstm3_sequence(h0, c0, xs, ts, kparams)
    jax.block_until_ready((seq_h, seq_c))
    ref_sh, ref_sc = reference_sequence(raw, h0, c0, xs, ts)
    assert jnp.allclose(seq_h, ref_sh, atol=1e-4, rtol=1e-4), "sequence new_h mismatch"
    assert jnp.allclose(seq_c, ref_sc, atol=1e-4, rtol=1e-4), "sequence c_tilde mismatch"

    print("KERNEL_OK")
</pallas_src>

<mosaic_0001>
module attributes {stable_mosaic.version = 11 : i64} {
  func.func @tlstm3_seq_kernel(%arg0: i32, %arg1: memref<1x32x16xf32, #tpu.memory_space<vmem>>, %arg2: memref<1x32x1xf32, #tpu.memory_space<vmem>>, %arg3: memref<32x32xf32, #tpu.memory_space<vmem>>, %arg4: memref<32x32xf32, #tpu.memory_space<vmem>>, %arg5: memref<16x384xf32, #tpu.memory_space<vmem>>, %arg6: memref<32x384xf32, #tpu.memory_space<vmem>>, %arg7: memref<8x384xf32, #tpu.memory_space<vmem>>, %arg8: memref<32x2xf32, #tpu.memory_space<vmem>>, %arg9: memref<32x32xf32, #tpu.memory_space<vmem>>, %arg10: memref<1x32x32xf32, #tpu.memory_space<vmem>>, %arg11: memref<1x32x32xf32, #tpu.memory_space<vmem>>, %arg12: memref<32x32xf32, #tpu.memory_space<vmem>>, %arg13: memref<32x32xf32, #tpu.memory_space<vmem>>) attributes {dimension_semantics = [#tpu.dimension_semantics<arbitrary>], iteration_bounds = array<i64: 1>, scalar_prefetch = 0 : i64, scratch_operands = 2 : i64, tpu.core_type = #tpu.core_type<tc>, window_params = [{transform_indices = @transform_0, window_bounds = array<i64: 1, 32, 16>}, {transform_indices = @transform_1, window_bounds = array<i64: 1, 32, 1>}, {pipeline_mode = #tpu.pipeline_mode<synchronous>, transform_indices = @transform_2, window_bounds = array<i64: 32, 32>}, {pipeline_mode = #tpu.pipeline_mode<synchronous>, transform_indices = @transform_3, window_bounds = array<i64: 32, 32>}, {pipeline_mode = #tpu.pipeline_mode<synchronous>, transform_indices = @transform_4, window_bounds = array<i64: 16, 384>}, {pipeline_mode = #tpu.pipeline_mode<synchronous>, transform_indices = @transform_5, window_bounds = array<i64: 32, 384>}, {pipeline_mode = #tpu.pipeline_mode<synchronous>, transform_indices = @transform_6, window_bounds = array<i64: 8, 384>}, {pipeline_mode = #tpu.pipeline_mode<synchronous>, transform_indices = @transform_7, window_bounds = array<i64: 32, 2>}, {pipeline_mode = #tpu.pipeline_mode<synchronous>, transform_indices = @transform_8, window_bounds = array<i64: 32, 32>}, {transform_indices = @transform_9, window_bounds = array<i64: 1, 32, 32>}, {transform_indices = @transform_10, window_bounds = array<i64: 1, 32, 32>}]} {
    %c0_i32 = arith.constant 0 : i32
    %0 = arith.cmpi eq, %arg0, %c0_i32 : i32
    %1 = arith.extui %0 : i1 to i32
    %c0_i32_0 = arith.constant 0 : i32
    %2 = arith.cmpi ne, %1, %c0_i32_0 : i32
    scf.if %2 {
      %c0_43 = arith.constant 0 : index
      %c0_44 = arith.constant 0 : index
      %95 = vector.load %arg3[%c0_43, %c0_44] : memref<32x32xf32, #tpu.memory_space<vmem>>, vector<32x32xf32>
      %c0_45 = arith.constant 0 : index
      %c0_46 = arith.constant 0 : index
      %96 = vector.load %arg12[%c0_45, %c0_46] : memref<32x32xf32, #tpu.memory_space<vmem>>, vector<32x32xf32>
      tpu.vector_store %arg12[%c0_45, %c0_46], %95 {strides = array<i32>} : memref<32x32xf32, #tpu.memory_space<vmem>>, vector<32x32xf32>,
      %c0_47 = arith.constant 0 : index
      %c0_48 = arith.constant 0 : index
      %97 = vector.load %arg4[%c0_47, %c0_48] : memref<32x32xf32, #tpu.memory_space<vmem>>, vector<32x32xf32>
      %c0_49 = arith.constant 0 : index
      %c0_50 = arith.constant 0 : index
      %98 = vector.load %arg13[%c0_49, %c0_50] : memref<32x32xf32, #tpu.memory_space<vmem>>, vector<32x32xf32>
      tpu.vector_store %arg13[%c0_49, %c0_50], %97 {strides = array<i32>} : memref<32x32xf32, #tpu.memory_space<vmem>>, vector<32x32xf32>,
    } else {
    }
    %c0 = arith.constant 0 : index
    %c0_1 = arith.constant 0 : index
    %c0_2 = arith.constant 0 : index
    %3 = vector.load %arg1[%c0, %c0_1, %c0_2] : memref<1x32x16xf32, #tpu.memory_space<vmem>>, vector<1x32x16xf32>
    %4 = vector.shape_cast %3 : vector<1x32x16xf32> to vector<32x16xf32>
    %c0_3 = arith.constant 0 : index
    %c0_4 = arith.constant 0 : index
    %c0_5 = arith.constant 0 : index
    %5 = vector.load %arg2[%c0_3, %c0_4, %c0_5] : memref<1x32x1xf32, #tpu.memory_space<vmem>>, vector<1x32x1xf32>
    %6 = vector.shape_cast %5 : vector<1x32x1xf32> to vector<32x1xf32>
    %c0_6 = arith.constant 0 : index
    %c0_7 = arith.constant 0 : index
    %7 = vector.load %arg12[%c0_6, %c0_7] : memref<32x32xf32, #tpu.memory_space<vmem>>, vector<32x32xf32>
    %c0_8 = arith.constant 0 : index
    %c0_9 = arith.constant 0 : index
    %8 = vector.load %arg13[%c0_8, %c0_9] : memref<32x32xf32, #tpu.memory_space<vmem>>, vector<32x32xf32>
    %c0_10 = arith.constant 0 : index
    %c0_11 = arith.constant 0 : index
    %9 = vector.load %arg5[%c0_10, %c0_11] : memref<16x384xf32, #tpu.memory_space<vmem>>, vector<16x384xf32>
    %cst = arith.constant dense<0.000000e+00> : vector<32x384xf32>
    %10 = tpu.matmul %4, %9, %cst {dimension_numbers = #tpu.dot_dimension_numbers<[1], [0], [0], [1], [0, 0, 1, 1], [], []>} : vector<32x16xf32>, vector<16x384xf32>, vector<32x384xf32> -> vector<32x384xf32>
    %c0_12 = arith.constant 0 : index
    %c0_13 = arith.constant 0 : index
    %11 = vector.load %arg6[%c0_12, %c0_13] : memref<32x384xf32, #tpu.memory_space<vmem>>, vector<32x384xf32>
    %cst_14 = arith.constant dense<0.000000e+00> : vector<32x384xf32>
    %12 = tpu.matmul %7, %11, %cst_14 {dimension_numbers = #tpu.dot_dimension_numbers<[1], [0], [0], [1], [0, 0, 1, 1], [], []>} : vector<32x32xf32>, vector<32x384xf32>, vector<32x384xf32> -> vector<32x384xf32>
    %13 = arith.addf %10, %12 : vector<32x384xf32>
    %14 = vector.extract_strided_slice %13 {offsets = [0, 0], sizes = [32, 32], strides = [1, 1]} : vector<32x384xf32> to vector<32x32xf32>
    %c0_15 = arith.constant 0 : index
    %c0_16 = arith.constant 0 : index
    %15 = vector.load %arg7[%c0_15, %c0_16] : memref<8x384xf32, #tpu.memory_space<vmem>>, vector<1x32xf32>
    %16 = vector.broadcast %15 : vector<1x32xf32> to vector<32x32xf32>
    %17 = arith.addf %14, %16 : vector<32x32xf32>
    %18 = vector.extract_strided_slice %13 {offsets = [0, 128], sizes = [32, 32], strides = [1, 1]} : vector<32x384xf32> to vector<32x32xf32>
    %c0_17 = arith.constant 0 : index
    %c128 = arith.constant 128 : index
    %19 = vector.load %arg7[%c0_17, %c128] : memref<8x384xf32, #tpu.memory_space<vmem>>, vector<1x32xf32>
    %20 = vector.broadcast %19 : vector<1x32xf32> to vector<32x32xf32>
    %21 = arith.addf %18, %20 : vector<32x32xf32>
    %22 = vector.extract_strided_slice %13 {offsets = [0, 256], sizes = [32, 32], strides = [1, 1]} : vector<32x384xf32> to vector<32x32xf32>
    %c0_18 = arith.constant 0 : index
    %c256 = arith.constant 256 : index
    %23 = vector.load %arg7[%c0_18, %c256] : memref<8x384xf32, #tpu.memory_space<vmem>>, vector<1x32xf32>
    %24 = vector.broadcast %23 : vector<1x32xf32> to vector<32x32xf32>
    %25 = arith.addf %22, %24 : vector<32x32xf32>
    %26 = vector.shape_cast %6 : vector<32x1xf32> to vector<32x1xf32>
    %27 = vector.broadcast %26 : vector<32x1xf32> to vector<32x32xf32>
    %c0_19 = arith.constant 0 : index
    %c0_20 = arith.constant 0 : index
    %28 = vector.load %arg8[%c0_19, %c0_20] : memref<32x2xf32, #tpu.memory_space<vmem>>, vector<32x2xf32>
    %29 = vector.broadcast %6 : vector<32x1xf32> to vector<32x2xf32>
    %30 = arith.mulf %28, %29 : vector<32x2xf32>
    %c1 = arith.constant 1 : index
    %c0_21 = arith.constant 0 : index
    %31 = vector.load %arg7[%c1, %c0_21] : memref<8x384xf32, #tpu.memory_space<vmem>>, vector<1x32xf32>
    %32 = vector.broadcast %31 : vector<1x32xf32> to vector<32x32xf32>
    %33 = arith.mulf %27, %32 : vector<32x32xf32>
    %34 = vector.extract_strided_slice %30 {offsets = [0, 0], sizes = [32, 1], strides = [1, 1]} : vector<32x2xf32> to vector<32x1xf32>
    %35 = vector.broadcast %34 : vector<32x1xf32> to vector<32x32xf32>
    %36 = arith.addf %33, %35 : vector<32x32xf32>
    %c3 = arith.constant 3 : index
    %c0_22 = arith.constant 0 : index
    %37 = vector.load %arg7[%c3, %c0_22] : memref<8x384xf32, #tpu.memory_space<vmem>>, vector<1x32xf32>
    %38 = vector.broadcast %37 : vector<1x32xf32> to vector<32x32xf32>
    %39 = arith.addf %36, %38 : vector<32x32xf32>
    %40 = arith.negf %39 : vector<32x32xf32>
    %41 = math.exp %40 : vector<32x32xf32>
    %cst_23 = arith.constant 1.000000e+00 : f32
    %42 = vector.broadcast %cst_23 : f32 to vector<32x32xf32>
    %43 = arith.addf %42, %41 : vector<32x32xf32>
    %44 = arith.divf %42, %43 : vector<32x32xf32>
    %c2 = arith.constant 2 : index
    %c0_24 = arith.constant 0 : index
    %45 = vector.load %arg7[%c2, %c0_24] : memref<8x384xf32, #tpu.memory_space<vmem>>, vector<1x32xf32>
    %46 = vector.broadcast %45 : vector<1x32xf32> to vector<32x32xf32>
    %47 = arith.mulf %27, %46 : vector<32x32xf32>
    %48 = vector.extract_strided_slice %30 {offsets = [0, 1], sizes = [32, 1], strides = [1, 1]} : vector<32x2xf32> to vector<32x1xf32>
    %49 = vector.broadcast %48 : vector<32x1xf32> to vector<32x32xf32>
    %50 = arith.addf %47, %49 : vector<32x32xf32>
    %c4 = arith.constant 4 : index
    %c0_25 = arith.constant 0 : index
    %51 = vector.load %arg7[%c4, %c0_25] : memref<8x384xf32, #tpu.memory_space<vmem>>, vector<1x32xf32>
    %52 = vector.broadcast %51 : vector<1x32xf32> to vector<32x32xf32>
    %53 = arith.addf %50, %52 : vector<32x32xf32>
    %54 = arith.negf %53 : vector<32x32xf32>
    %55 = math.exp %54 : vector<32x32xf32>
    %cst_26 = arith.constant 1.000000e+00 : f32
    %56 = vector.broadcast %cst_26 : f32 to vector<32x32xf32>
    %57 = arith.addf %56, %55 : vector<32x32xf32>
    %58 = arith.divf %56, %57 : vector<32x32xf32>
    %59 = arith.negf %17 : vector<32x32xf32>
    %60 = math.exp %59 : vector<32x32xf32>
    %cst_27 = arith.constant 1.000000e+00 : f32
    %61 = vector.broadcast %cst_27 : f32 to vector<32x32xf32>
    %62 = arith.addf %61, %60 : vector<32x32xf32>
    %63 = arith.divf %61, %62 : vector<32x32xf32>
    %c0_28 = arith.constant 0 : index
    %c0_29 = arith.constant 0 : index
    %64 = vector.load %arg9[%c0_28, %c0_29] : memref<32x32xf32, #tpu.memory_space<vmem>>, vector<32x32xf32>
    %65 = arith.mulf %27, %64 : vector<32x32xf32>
    %66 = arith.addf %21, %65 : vector<32x32xf32>
    %67 = arith.negf %66 : vector<32x32xf32>
    %68 = math.exp %67 : vector<32x32xf32>
    %cst_30 = arith.constant 1.000000e+00 : f32
    %69 = vector.broadcast %cst_30 : f32 to vector<32x32xf32>
    %70 = arith.addf %69, %68 : vector<32x32xf32>
    %71 = arith.divf %69, %70 : vector<32x32xf32>
    %72 = math.tanh %25 : vector<32x32xf32>
    %73 = arith.mulf %63, %44 : vector<32x32xf32>
    %cst_31 = arith.constant 1.000000e+00 : f32
    %74 = vector.broadcast %cst_31 : f32 to vector<32x32xf32>
    %75 = arith.subf %74, %73 : vector<32x32xf32>
    %76 = arith.mulf %75, %8 : vector<32x32xf32>
    %77 = arith.mulf %73, %72 : vector<32x32xf32>
    %78 = arith.addf %76, %77 : vector<32x32xf32>
    %cst_32 = arith.constant 1.000000e+00 : f32
    %79 = vector.broadcast %cst_32 : f32 to vector<32x32xf32>
    %80 = arith.subf %79, %63 : vector<32x32xf32>
    %81 = arith.mulf %80, %8 : vector<32x32xf32>
    %82 = arith.mulf %63, %58 : vector<32x32xf32>
    %83 = arith.mulf %82, %72 : vector<32x32xf32>
    %84 = arith.addf %81, %83 : vector<32x32xf32>
    %85 = math.tanh %78 : vector<32x32xf32>
    %86 = arith.mulf %71, %85 : vector<32x32xf32>
    %c0_33 = arith.constant 0 : index
    %c0_34 = arith.constant 0 : index
    %c0_35 = arith.constant 0 : index
    %87 = vector.load %arg10[%c0_33, %c0_34, %c0_35] : memref<1x32x32xf32, #tpu.memory_space<vmem>>, vector<1x32x32xf32>
    %88 = vector.shape_cast %87 : vector<1x32x32xf32> to vector<32x32xf32>
    %89 = vector.shape_cast %86 : vector<32x32xf32> to vector<1x32x32xf32>
    tpu.vector_store %arg10[%c0_33, %c0_34, %c0_35], %89 {strides = array<i32>} : memref<1x32x32xf32, #tpu.memory_space<vmem>>, vector<1x32x32xf32>,
    %c0_36 = arith.constant 0 : index
    %c0_37 = arith.constant 0 : index
    %c0_38 = arith.constant 0 : index
    %90 = vector.load %arg11[%c0_36, %c0_37, %c0_38] : memref<1x32x32xf32, #tpu.memory_space<vmem>>, vector<1x32x32xf32>
    %91 = vector.shape_cast %90 : vector<1x32x32xf32> to vector<32x32xf32>
    %92 = vector.shape_cast %84 : vector<32x32xf32> to vector<1x32x32xf32>
    tpu.vector_store %arg11[%c0_36, %c0_37, %c0_38], %92 {strides = array<i32>} : memref<1x32x32xf32, #tpu.memory_space<vmem>>, vector<1x32x32xf32>,
    %c0_39 = arith.constant 0 : index
    %c0_40 = arith.constant 0 : index
    %93 = vector.load %arg12[%c0_39, %c0_40] : memref<32x32xf32, #tpu.memory_space<vmem>>, vector<32x32xf32>
    tpu.vector_store %arg12[%c0_39, %c0_40], %86 {strides = array<i32>} : memref<32x32xf32, #tpu.memory_space<vmem>>, vector<32x32xf32>,
    %c0_41 = arith.constant 0 : index
    %c0_42 = arith.constant 0 : index
    %94 = vector.load %arg13[%c0_41, %c0_42] : memref<32x32xf32, #tpu.memory_space<vmem>>, vector<32x32xf32>
    tpu.vector_store %arg13[%c0_41, %c0_42], %84 {strides = array<i32>} : memref<32x32xf32, #tpu.memory_space<vmem>>, vector<32x32xf32>,
    return
  }
  func.func @transform_0(%arg0: i32) -> (i32, i32, i32) {
    %c0_i32 = arith.constant 0 : i32
    %c0_i32_0 = arith.constant 0 : i32
    %c0_i32_1 = arith.constant 0 : i32
    return %arg0, %c0_i32, %c0_i32_0 : i32, i32, i32
  }
  func.func @transform_1(%arg0: i32) -> (i32, i32, i32) {
    %c0_i32 = arith.constant 0 : i32
    %c0_i32_0 = arith.constant 0 : i32
    %c0_i32_1 = arith.constant 0 : i32
    return %arg0, %c0_i32, %c0_i32_0 : i32, i32, i32
  }
  func.func @transform_2(%arg0: i32) -> (i32, i32) {
    %c0_i32 = arith.constant 0 : i32
    %c0_i32_0 = arith.constant 0 : i32
    %c0_i32_1 = arith.constant 0 : i32
    return %c0_i32, %c0_i32_0 : i32, i32
  }
  func.func @transform_3(%arg0: i32) -> (i32, i32) {
    %c0_i32 = arith.constant 0 : i32
    %c0_i32_0 = arith.constant 0 : i32
    %c0_i32_1 = arith.constant 0 : i32
    return %c0_i32, %c0_i32_0 : i32, i32
  }
  func.func @transform_4(%arg0: i32) -> (i32, i32) {
    %c0_i32 = arith.constant 0 : i32
    %c0_i32_0 = arith.constant 0 : i32
    %c0_i32_1 = arith.constant 0 : i32
    return %c0_i32, %c0_i32_0 : i32, i32
  }
  func.func @transform_5(%arg0: i32) -> (i32, i32) {
    %c0_i32 = arith.constant 0 : i32
    %c0_i32_0 = arith.constant 0 : i32
    %c0_i32_1 = arith.constant 0 : i32
    return %c0_i32, %c0_i32_0 : i32, i32
  }
  func.func @transform_6(%arg0: i32) -> (i32, i32) {
    %c0_i32 = arith.constant 0 : i32
    %c0_i32_0 = arith.constant 0 : i32
    %c0_i32_1 = arith.constant 0 : i32
    return %c0_i32, %c0_i32_0 : i32, i32
  }
  func.func @transform_7(%arg0: i32) -> (i32, i32) {
    %c0_i32 = arith.constant 0 : i32
    %c0_i32_0 = arith.constant 0 : i32
    %c0_i32_1 = arith.constant 0 : i32
    return %c0_i32, %c0_i32_0 : i32, i32
  }
  func.func @transform_8(%arg0: i32) -> (i32, i32) {
    %c0_i32 = arith.constant 0 : i32
    %c0_i32_0 = arith.constant 0 : i32
    %c0_i32_1 = arith.constant 0 : i32
    return %c0_i32, %c0_i32_0 : i32, i32
  }
  func.func @transform_9(%arg0: i32) -> (i32, i32, i32) {
    %c0_i32 = arith.constant 0 : i32
    %c0_i32_0 = arith.constant 0 : i32
    %c0_i32_1 = arith.constant 0 : i32
    return %arg0, %c0_i32, %c0_i32_0 : i32, i32, i32
  }
  func.func @transform_10(%arg0: i32) -> (i32, i32, i32) {
    %c0_i32 = arith.constant 0 : i32
    %c0_i32_0 = arith.constant 0 : i32
    %c0_i32_1 = arith.constant 0 : i32
    return %arg0, %c0_i32, %c0_i32_0 : i32, i32, i32
  }
}

</mosaic_0001>

<bundles_post_ra>
// kernel: tlstm3_sequence.1
= control target key start
LH: loop header
LB: loop body
LE: loop exit
PB: predicated region body
PF: predicated region fallthrough
CT: control target
= control target key end

     0   :  { %16 = vsyncpa [#allocation5], 0  ;;  %s1560_s0 = inlined_call_operand.vmem [shape: f32[1,32,16], index: 0, kind: input, shape index: {}]   ;;  %s1561_s1 = inlined_call_operand.vmem [shape: f32[1,32,1], index: 1, kind: input, shape index: {}]   ;;  %s1562_s2 = inlined_call_operand.hbm [shape: f32[32,32], index: 2, kind: input, shape index: {}]   ;;  %s1563_s3 = inlined_call_operand.hbm [shape: f32[32,32], index: 3, kind: input, shape index: {}]   ;;  %s1564_s4 = inlined_call_operand.vmem [shape: f32[16,384], index: 4, kind: input, shape index: {}]   ;;  %s1565_s5 = inlined_call_operand.vmem [shape: f32[32,384], index: 5, kind: input, shape index: {}]   ;;  %s1566_s6 = inlined_call_operand.hbm [shape: f32[8,384], index: 6, kind: input, shape index: {}]   ;;  %s1567_s7 = inlined_call_operand.vmem [shape: f32[32,2], index: 7, kind: input, shape index: {}]   ;;  %s1568_s8 = inlined_call_operand.hbm [shape: f32[32,32], index: 8, kind: input, shape index: {}]   ;;  %s1569_s9 = inlined_call_operand.hbm [shape: f32[1,32,32], index: 9, kind: output, shape index: {0}]   ;;  %s1570_s10 = inlined_call_operand.hbm [shape: f32[1,32,32], index: 10, kind: output, shape index: {1}]  }
   0x1   :  { %17 = vsyncpa [#allocation8], 0 }
   0x2   :  { %18 = vsyncpa [#allocation11], 0 }
   0x3   :  { %19 = vsyncpa [#allocation6], 0 }
   0x4   :  { %20 = vsyncpa [#allocation14], 0  ;;  %s1183_s13 = smov [#allocation7]   ;;  %s1184_s15 = smov [#allocation4]  }
   0x5   :  { %s42_s14 = sshll.u32 %s1183_s13, 4  ;;  %s30_s16 = sshll.u32 %s1184_s15, 4  ;;  %s43_s14 = int_to_ptr.vmem [resolvable:$true] %s42_s14  ;;  %s1249_s16 = int_to_ptr.vmem [resolvable:$true] %s30_s16 }
   0x6   :  { %s1041_s19 = scalar_lea.hbm %s1563_s3, 512 }
   0x7   :  { %p1042_p0 = scmp.ne.s32.totalorder %s1563_s3, %s1041_s19  ;;  %p1045_p1 = scmp.lt.u32.totalorder %s1041_s19, %s1563_s3 }
   0x9   :  { %p1047_p2 = pnand %p1045_p1, %p1042_p0 }
   0xb   :  { %1050 = shalt.err (!%p1047_p2)
}
   0xc   :  { %s1051_s24 = scalar_lea.vmem %s43_s14, 512  ;;  %p1056_p4 = scmp.lt.s32.totalorder %s43_s14, %s43_s14 }
   0xd   :  { %p1052_p3 = scmp.ne.s32.totalorder %s43_s14, %s1051_s24  ;;  %p1057_p5 = scmp.lt.s32.totalorder %s1051_s24, %s1051_s24 }
   0xf   :  { %p1058_p6 = por %p1057_p5, %p1056_p4 }
  0x11   :  { %p1059_p7 = pnand %p1058_p6, %p1052_p3 }
  0x13   :  { %1062 = shalt.err (!%p1059_p7)
}
  0x14   :  { %s1185_s25 = smov 128   ;;  %s1186_s26 = smov 8  }
  0x15   :  { %48 = dma.hbm_to_vmem [thread:$0]  %s1563_s3, 512, %s43_s14, [#allocation8], %s1185_s25, %s1185_s25, %s1186_s26  }
  0x16   :  { %s1063_s11 = scalar_lea.hbm %s1562_s2, 512 }
  0x17   :  { %p1064_p8 = scmp.ne.s32.totalorder %s1562_s2, %s1063_s11  ;;  %p1067_p9 = scmp.lt.u32.totalorder %s1063_s11, %s1562_s2 }
  0x19   :  { %p1069_p10 = pnand %p1067_p9, %p1064_p8 }
  0x1b   :  { %1072 = shalt.err (!%p1069_p10)
}
  0x1c   :  { %s1073_s18 = scalar_lea.vmem %s1249_s16, 512  ;;  %p1078_p12 = scmp.lt.s32.totalorder %s1249_s16, %s1249_s16 }
  0x1d   :  { %p1074_p11 = scmp.ne.s32.totalorder %s1249_s16, %s1073_s18  ;;  %p1079_p13 = scmp.lt.s32.totalorder %s1073_s18, %s1073_s18 }
  0x1f   :  { %p1080_p0 = por %p1079_p13, %p1078_p12 }
  0x21   :  { %p1081_p1 = pnand %p1080_p0, %p1074_p11 }
  0x23   :  { %1084 = shalt.err (!%p1081_p1)
}
  0x24   :  { %36 = dma.hbm_to_vmem [thread:$0]  %s1562_s2, 512, %s1249_s16, [#allocation5], %s1185_s25, %s1185_s25, %s1186_s26  }
  0x25   :  { %s1187_s19 = smov [#allocation9]   ;;  %s1188_s21 = smov [#allocation10]  }
  0x26   :  { %s59_s20 = sshll.u32 %s1187_s19, 4  ;;  %s70_s22 = sshll.u32 %s1188_s21, 4  ;;  %s60_s20 = int_to_ptr.vmem [resolvable:$true] %s59_s20  ;;  %s1286_s22 = int_to_ptr.vmem [resolvable:$true] %s70_s22 }
  0x27   :  { %s1085_s27 = scalar_lea.hbm %s1566_s6, 384 }
  0x28   :  { %p1086_p2 = scmp.ne.s32.totalorder %s1566_s6, %s1085_s27  ;;  %p1089_p3 = scmp.lt.u32.totalorder %s1085_s27, %s1566_s6 }
  0x2a   :  { %p1091_p4 = pnand %p1089_p3, %p1086_p2 }
  0x2c   :  { %1094 = shalt.err (!%p1091_p4)
}
  0x2d   :  { %s1095_s2 = scalar_lea.vmem %s60_s20, 384  ;;  %p1100_p6 = scmp.lt.s32.totalorder %s60_s20, %s60_s20 }
  0x2e   :  { %p1096_p5 = scmp.ne.s32.totalorder %s60_s20, %s1095_s2  ;;  %p1101_p7 = scmp.lt.s32.totalorder %s1095_s2, %s1095_s2 }
  0x30   :  { %p1102_p8 = por %p1101_p7, %p1100_p6 }
  0x32   :  { %p1103_p9 = pnand %p1102_p8, %p1096_p5 }
  0x34   :  { %1106 = shalt.err (!%p1103_p9)
}
  0x35   :  { %62 = dma.hbm_to_vmem [thread:$0]  %s1566_s6, 384, %s60_s20, [#allocation8]  }
  0x36   :  { %s1107_s17 = scalar_lea.hbm %s1568_s8, 512 }
  0x37   :  { %p1108_p10 = scmp.ne.s32.totalorder %s1568_s8, %s1107_s17  ;;  %p1111_p11 = scmp.lt.u32.totalorder %s1107_s17, %s1568_s8 }
  0x39   :  { %p1113_p12 = pnand %p1111_p11, %p1108_p10 }
  0x3b   :  { %1116 = shalt.err (!%p1113_p12)
}
  0x3c   :  { %s1117_s21 = scalar_lea.vmem %s1286_s22, 512  ;;  %p1122_p0 = scmp.lt.s32.totalorder %s1286_s22, %s1286_s22 }
  0x3d   :  { %p1118_p13 = scmp.ne.s32.totalorder %s1286_s22, %s1117_s21  ;;  %p1123_p1 = scmp.lt.s32.totalorder %s1117_s21, %s1117_s21 }
  0x3f   :  { %p1124_p2 = por %p1123_p1, %p1122_p0 }
  0x41   :  { %p1125_p3 = pnand %p1124_p2, %p1118_p13 }
  0x43   :  { %1128 = shalt.err (!%p1125_p3)
}
  0x44   :  { %76 = dma.hbm_to_vmem [thread:$0]  %s1568_s8, 512, %s1286_s22, [#allocation11], %s1185_s25, %s1185_s25, %s1186_s26  }
  0x45   :  { %1173 = dma.done.wait [#allocation5], 512  }
  0x46   :  { %1174 = vsyncadd [#allocation5], 4294966784 }
  0x47   :  { %1175 = dma.done.wait [#allocation8], 896  }
  0x48   :  { %1176 = vsyncadd [#allocation8], 4294966400 }
  0x49   :  { %1177 = dma.done.wait [#allocation11], 512  }
  0x4a   :  { %1178 = vsyncadd [#allocation11], 4294966784  ;;  %v1189_v0 = vmov 0   ;;  %v1190_v1 = vmov 0.0   ;;  %v116_v2 = vld [vmem:[%s1561_s1 + $0x10] sm:$0xff]  ;;  %v114_v3 = vld [vmem:[%s1561_s1] sm:$0xff] }
  0x4b   :  { %958 = vset.pattern.permute.xlu1 %v1189_v0  ;;  %957 = vset.pattern.permute.xlu0 %v1189_v0  ;;  %v133_v4 = vld [vmem:[%s1565_s5 + $0x8] sm:$0xff]  ;;  %v136_v5 = vld [vmem:[%s1565_s5 + $0x20] sm:$0xff]  ;;  %v135_v7 = vld [vmem:[%s1565_s5 + $0x18] sm:$0xff]  ;;  %vm97_vm0 = vcmask 261120   ;;  %vm331_vm1 = vcmask 130048   ;;  %v1191_v57 = vmov 1  }
  0x4c   :  { %221 = vmatprep.mubr.f32.mxu0 %v1190_v1  ;;  %233 = vmatprep.mubr.f32.mxu1 %v1190_v1  ;;  %v132_v6 = vld [vmem:[%s1565_s5] sm:$0xff]  ;;  %v906_v8 = vpack.c.bf16 %v136_v5, %v133_v4  ;;  %v117_v10 = vld [vmem:[%s1561_s1 + $0x18] sm:$0xff]  ;;  %v115_v11 = vld [vmem:[%s1561_s1 + $0x8] sm:$0xff]  ;;  %s1193_s13 = smov [#allocation12]  }
  0x4d   :  { %545 = vperm.xlu1 %958, %v116_v2   ;;  %535 = vperm.xlu0 %957, %v114_v3   ;;  %v908_v9 = vpack.c.bf16 %v135_v7, %v132_v6  ;;  %v139_v12 = vld [vmem:[%s1565_s5 + $0x38] sm:$0xff]  ;;  %v142_v13 = vld [vmem:[%s1565_s5 + $0x50] sm:$0xff]  ;;  %v141_v15 = vld [vmem:[%s1565_s5 + $0x48] sm:$0xff]  ;;  %s806_s15 = sshll.u32 %s1193_s13, 4  ;;  %s807_s15 = int_to_ptr.vmem [resolvable:$true] %s806_s15 }
  0x4e   :  { %v138_v14 = vld [vmem:[%s1565_s5 + $0x30] sm:$0xff]  ;;  %907 = vmatprep.subr.bf16.mxu0 %v906_v8  ;;  %v910_v16 = vpack.c.bf16 %v142_v13, %v139_v12  ;;  %v93_v17 = vld [vmem:[#allocation4] sm:$0xff]  ;;  %v94_v18 = vld [vmem:[#allocation4 + $0x8] sm:$0xff]  ;;  %930 = vmatprep.subr.bf16.mxu1 %v906_v8 }
  0x4f   :  { %v127_v19 = vld [vmem:[%s1564_s4 + $0x8] sm:$0xff]  ;;  %909 = vmatpush1.bf16.msra.mxu0 %v908_v9  ;;  %v912_v20 = vpack.c.bf16 %v141_v15, %v138_v14  ;;  %98 = vst.msk [vmem:[#allocation2] sm:$0xff] %vm97_vm0, %v93_v17  ;;  %99 = vst.msk [vmem:[#allocation2 + $0x8] sm:$0xff] %vm97_vm0, %v94_v18  ;;  %v130_v21 = vld [vmem:[%s1564_s4 + $0x20] sm:$0xff]  ;;  %932 = vmatpush1.bf16.msra.mxu1 %v908_v9 }
  0x50   :  { %911 = vmatprep.subr.bf16.mxu0 %v910_v16  ;;  %v922_v22 = vpack.c.bf16 %v130_v21, %v127_v19  ;;  %v95_v23 = vld [vmem:[#allocation4 + $0x10] sm:$0xff]  ;;  %v126_v24 = vld [vmem:[%s1564_s4] sm:$0xff]  ;;  %v129_v25 = vld [vmem:[%s1564_s4 + $0x18] sm:$0xff]  ;;  %931 = vmatprep.subr.bf16.mxu1 %v910_v16 }
  0x51   :  { %550 = vperm.xlu1 %958, %v117_v10   ;;  %540 = vperm.xlu0 %957, %v115_v11   ;;  %100 = vst.msk [vmem:[#allocation2 + $0x10] sm:$0xff] %vm97_vm0, %v95_v23  ;;  %v96_v26 = vld [vmem:[#allocation4 + $0x18] sm:$0xff]  ;;  %v134_v27 = vld [vmem:[%s1565_s5 + $0x10] sm:$0xff]  ;;  %v137_v28 = vld [vmem:[%s1565_s5 + $0x28] sm:$0xff]  ;;  %v924_v30 = vpack.c.bf16 %v129_v25, %v126_v24 }
  0x52   :  { %101 = vst.msk [vmem:[#allocation2 + $0x18] sm:$0xff] %vm97_vm0, %v96_v26  ;;  %v914_v29 = vpack.c.bf16 %v137_v28, %v134_v27  ;;  %v140_v31 = vld [vmem:[%s1565_s5 + $0x40] sm:$0xff]  ;;  %v143_v32 = vld [vmem:[%s1565_s5 + $0x58] sm:$0xff]  ;;  %v128_v35 = vld [vmem:[%s1564_s4 + $0x10] sm:$0xff] }
  0x53   :  { %913 = vmatpush1.bf16.msra.mxu0 %v912_v20  ;;  %933 = vmatpush1.bf16.msra.mxu1 %v912_v20  ;;  %v918_v34 = vpack.c.bf16 %v143_v32, %v140_v31  ;;  %v131_v38 = vld [vmem:[%s1564_s4 + $0x28] sm:$0xff]  ;;  %v110_v41 = vld [vmem:[%s1560_s0] sm:$0xff]  ;;  %v112_v43 = vld [vmem:[%s1560_s0 + $0x10] sm:$0xff] }
  0x54   :  { %923 = vmatprep.subr.bf16.mxu0 %v922_v22  ;;  %915 = vmatprep.subr.bf16.mxu1 %v914_v29  ;;  %v926_v40 = vpack.c.bf16 %v131_v38, %v128_v35  ;;  %v111_v42 = vld [vmem:[%s1560_s0 + $0x8] sm:$0xff]  ;;  %v113_v44 = vld [vmem:[%s1560_s0 + $0x18] sm:$0xff]  ;;  %v553_v45 = vld [vmem:[%s1567_s7] sm:$0xff] }
  0x55   :  { %v555_v47 = vld [vmem:[%s1567_s7 + $0x10] sm:$0xff]  ;;  %v554_v51 = vld [vmem:[%s1567_s7 + $0x8] sm:$0xff]  ;;  %v556_v55 = vld [vmem:[%s1567_s7 + $0x18] sm:$0xff]  ;;  %s1192_s7 = smov [#allocation13]  }
  0x56   :  { %v118_v33 = vld [vmem:[#allocation2] sm:$0xff]  ;;  %v119_v36 = vld [vmem:[#allocation2 + $0x8] sm:$0xff]  ;;  %v104_v60 = vld [vmem:[#allocation7 + $0x10] sm:$0xff]  ;;  %s818_s12 = sshll.u32 %s1192_s7, 4  ;;  %s819_s12 = int_to_ptr.vmem [resolvable:$true] %s818_s12 }
  0x57   :  { %836 = vmatmul.mubr.msk.f32.vlgmr.msra.gmra.mrb[0].mxu0 %vm97_vm0, %v118_v33  ;;  %v102_v58 = vld [vmem:[#allocation7] sm:$0xff]  ;;  %v103_v59 = vld [vmem:[#allocation7 + $0x8] sm:$0xff]  ;;  %108 = vst.msk [vmem:[#allocation3 + $0x10] sm:$0xff] %vm97_vm0, %v104_v60  ;;  %v105_v61 = vld [vmem:[#allocation7 + $0x18] sm:$0xff]  ;;  %s1129_s17 = scalar_lea.vmem %s819_s12, 512  ;;  %p1134_p5 = scmp.lt.s32.totalorder %s819_s12, %s819_s12 }
  0x58   :  { %227 = vmatprep.mubr.f32.mxu0 %v1190_v1  ;;  %925 = vmatpush1.bf16.msra.mxu0 %v924_v30  ;;  %v120_v37 = vld [vmem:[#allocation2 + $0x10] sm:$0xff]  ;;  %106 = vst.msk [vmem:[#allocation3] sm:$0xff] %vm97_vm0, %v102_v58  ;;  %107 = vst.msk [vmem:[#allocation3 + $0x8] sm:$0xff] %vm97_vm0, %v103_v59  ;;  %v697_v2 = vld [vmem:[#allocation10] sm:$0xff]  ;;  %p1130_p4 = scmp.ne.s32.totalorder %s819_s12, %s1129_s17  ;;  %p1135_p6 = scmp.lt.s32.totalorder %s1129_s17, %s1129_s17 }
  0x59   :  { %838 = vmatmul.mubr.msk.f32.vlgmr.msra.gmra.mrb[0].mxu1 %vm97_vm0, %v120_v37  ;;  %v121_v39 = vld [vmem:[#allocation2 + $0x18] sm:$0xff]  ;;  %109 = vst.msk [vmem:[#allocation3 + $0x18] sm:$0xff] %vm97_vm0, %v105_v61  ;;  %v699_v12 = vld [vmem:[#allocation10 + $0x10] sm:$0xff]  ;;  %v518_v17 = vld [vmem:[#allocation9] ss:$0 sm:$0xff] }
  0x5a   :  { %239 = vmatprep.mubr.f32.mxu1 %v1190_v1  ;;  %917 = vmatpush3.bf16.msra.mxu1 %v914_v29  ;;  %v698_v31 = vld [vmem:[#allocation10 + $0x8] sm:$0xff]  ;;  %p1136_p7 = por %p1135_p6, %p1134_p5 }
  0x5b   :  { %837 = vmatmul.mubr.msk.f32.gmra.mrb[2].mxu0 %vm97_vm0, %v119_v36  ;;  %919 = vmatprep.subr.bf16.mxu1 %v918_v34  ;;  %v561_v35 = vld [vmem:[#allocation9 + $0x1] ss:$0 sm:$0xff]  ;;  %v619_v59 = vld [vmem:[#allocation9 + $0x2] ss:$0 sm:$0xff] }
  0x5c   :  { %408 = vmatprep.mubr.f32.mxu0 %v1190_v1  ;;  %p1137_p8 = pnand %p1136_p7, %p1130_p4 }
  0x5d   :  { %839 = vmatmul.mubr.msk.f32.gmra.mrb[2].mxu1 %vm97_vm0, %v121_v39 }
  0x5e   :  { %921 = vmatpush3.bf16.msra.mxu1 %v918_v34  ;;  %890 = vmatprep.mubr.msk.f32.mxu1 %vm97_vm0, %v118_v33 }
  0x5f   :  { %844 = vmatmul.mubr.msk.f32.vlgmr.msra.gmra.mrb[0].mxu0 %vm331_vm1, %v110_v41  ;;  %927 = vmatprep.subr.bf16.mxu1 %v926_v40 }
  0x60   :  { %414 = vmatprep.mubr.f32.mxu0 %v1190_v1 }
  0x61   :  { %891 = vmatmul.mubr.msk.f32.vlgmr.msra.gmra.mrb[4].mxu1 %vm97_vm0, %v119_v36 }
  0x62   :  { %893 = vmatprep.mubr.msk.f32.mxu1 %vm97_vm0, %v120_v37  ;;  %929 = vmatpush3.bf16.msra.mxu1 %v926_v40  ;;  %v590_v40 = vld [vmem:[#allocation9 + $0x3] ss:$0 sm:$0xff] }
  0x63   :  { %845 = vmatmul.mubr.msk.f32.gmra.mrb[2].mxu0 %vm331_vm1, %v111_v42 }
  0x64   :  { %420 = vmatprep.mubr.f32.mxu0 %v1190_v1 }
  0x65   :  { %894 = vmatmul.mubr.msk.f32.gmra.mrb[6].mxu1 %vm97_vm0, %v121_v39 }
  0x66   :  { %900 = vmatprep.mubr.msk.f32.mxu1 %vm331_vm1, %v110_v41 }
  0x67   :  { %846 = vmatmul.mubr.msk.f32.gmra.mrb[4].mxu0 %vm331_vm1, %v112_v43 }
  0x68   :  { %426 = vmatprep.mubr.f32.mxu0 %v1190_v1  ;;  %v1454_v1 = vld [vmem:[#allocation9 + $0x8] ss:$0 sm:$0xff] }
  0x69   :  { %901 = vmatmul.mubr.msk.f32.vlgmr.msra.gmra.mrb[4].mxu1 %vm331_vm1, %v111_v42  ;;  %v1469_v42 = vld [vmem:[#allocation9 + $0x10] ss:$0 sm:$0xff] }
  0x6a   :  { %903 = vmatprep.mubr.msk.f32.mxu1 %vm331_vm1, %v112_v43 }
  0x6b   :  { %847 = vmatmul.mubr.msk.f32.gmra.mrb[6].mxu0 %vm331_vm1, %v113_v44 }
  0x6d   :  { %904 = vmatmul.mubr.msk.f32.gmra.mrb[6].mxu1 %vm331_vm1, %v113_v44 }
  0xcc   :  { %v1429_v46 = vpop.permute.xlu0 %535  ;;  %v1434_v48 = vpop.permute.xlu1 %545 }
  0xcd   :  { %v557_v49 = vmul.f32 %v553_v45, %v1429_v46  ;;  %v559_v50 = vmul.f32 %v555_v47, %v1434_v48  ;;  %v701_v7 = vmul.f32 %v697_v2, %v1429_v46  ;;  %v703_v19 = vmul.f32 %v699_v12, %v1434_v48 }
  0xce   :  { %v562_v39 = vmul.f32 %v561_v35, %v1429_v46 }
  0xcf   :  { %568 = vperm.xlu0 %957, %v557_v49  }
  0xd0   :  { %v1441_v52 = vpop.permute.xlu0 %540  ;;  %v1444_v54 = vpop.permute.xlu1 %550 }
  0xd1   :  { %v558_v53 = vmul.f32 %v554_v51, %v1441_v52  ;;  %v560_v56 = vmul.f32 %v556_v55, %v1444_v54  ;;  %v702_v34 = vmul.f32 %v698_v31, %v1441_v52 }
  0xd3   :  { %578 = vperm.xlu0 %957, %v559_v50   ;;  %573 = vperm.xlu1 %958, %v558_v53  }
  0xd7   :  { %959 = vset.pattern.permute.xlu0 %v1191_v57  ;;  %583 = vperm.xlu1 %958, %v560_v56  }
  0xd8   :  { %625 = vperm.xlu0 %959, %v557_v49  }
  0xdb   :  { %960 = vset.pattern.permute.xlu1 %v1191_v57 }
  0xdc   :  { %637 = vperm.xlu0 %959, %v560_v56   ;;  %629 = vperm.xlu1 %960, %v558_v53   ;;  %v563_v53 = vmul.f32 %v561_v35, %v1441_v52 }
  0xe0   :  { %633 = vperm.xlu1 %960, %v559_v50   ;;  %v564_v50 = vmul.f32 %v561_v35, %v1434_v48 }
 0x12c   :  { %v235_v62 = vpop.f32.mrb[0].mxu1 }
 0x12d   :  { %v237_v63 = vpop.f32.mrb[1].mxu1 }
 0x130   :  { %v241_v0 = vpop.f32.mrb[2].mxu1 }
 0x131   :  { %v243_v3 = vpop.f32.mrb[3].mxu1 }
 0x132   :  { %v410_v4 = vpop.f32.mrb[0].mxu0 }
 0x133   :  { %v412_v5 = vpop.f32.mrb[1].mxu0  ;;  %v519_v24 = vadd.f32 %v518_v17, %v410_v4  ;;  %v620_v4 = vmul.f32 %v619_v59, %v1429_v46  ;;  %v621_v46 = vmul.f32 %v619_v59, %v1441_v52 }
 0x134   :  { %v524_v6 = vadd.f32 %v1454_v1, %v412_v5 }
 0x135   :  { %v860_v29 = vmul.f32 -1.442695, %v519_v24 }
 0x136   :  { %v705_v8 = vadd.f32 %v701_v7, %v524_v6  ;;  %v416_v9 = vpop.f32.mrb[2].mxu0 }
 0x137   :  { %v418_v10 = vpop.f32.mrb[3].mxu0  ;;  %v520_v30 = vadd.f32 %v518_v17, %v416_v9  ;;  %961 = vpow2.f32 %v860_v29 }
 0x138   :  { %v525_v32 = vadd.f32 %v1454_v1, %v418_v10  ;;  %v864_v43 = vmul.f32 -1.442695, %v705_v8  ;;  %v644_v8 = vld [vmem:[#allocation9 + $0x4] ss:$0 sm:$0xff] }
 0x139   :  { %v861_v36 = vmul.f32 -1.442695, %v520_v30  ;;  %v700_v30 = vld [vmem:[#allocation10 + $0x18] sm:$0xff] }
 0x13a   :  { %v422_v11 = vpop.f32.mrb[4].mxu0  ;;  %v706_v37 = vadd.f32 %v702_v34, %v525_v32 }
 0x13b   :  { %v423_v13 = vadd.f32 %v422_v11, %v235_v62  ;;  %v424_v14 = vpop.f32.mrb[5].mxu0  ;;  %963 = vpow2.f32 %v861_v36  ;;  %v622_v36 = vmul.f32 %v619_v59, %v1434_v48 }
 0x13c   :  { %v425_v15 = vadd.f32 %v424_v14, %v237_v63  ;;  %v902_v16 = vpop.f32.mrb[4].mxu1  ;;  %v865_v45 = vmul.f32 -1.442695, %v706_v37 }
 0x13d   :  { %v499_v18 = vpop.f32.mrb[5].mxu1  ;;  %v521_v33 = vadd.f32 %v518_v17, %v423_v13  ;;  %v530_v51 = vadd.f32 %v902_v16, %v1469_v42 }
 0x13e   :  { %v526_v20 = vadd.f32 %v1454_v1, %v425_v15  ;;  %v428_v21 = vpop.f32.mrb[6].mxu0  ;;  %v529_v60 = vadd.f32 %v1469_v42, %v499_v18  ;;  %v623_v18 = vmul.f32 %v619_v59, %v1444_v54 }
 0x13f   :  { %v429_v22 = vadd.f32 %v428_v21, %v241_v0  ;;  %v430_v23 = vpop.f32.mrb[7].mxu0  ;;  %v862_v38 = vmul.f32 -1.442695, %v521_v33 }
 0x140   :  { %v707_v25 = vadd.f32 %v703_v19, %v526_v20  ;;  %v1460_v26 = vadd.f32 %v430_v23, %v243_v3  ;;  %v1462_v27 = vpop.f32.mrb[6].mxu1  ;;  %v565_v3 = vmul.f32 %v561_v35, %v1444_v54 }
 0x141   :  { %v1464_v28 = vpop.f32.mrb[7].mxu1  ;;  %965 = vpow2.f32 %v862_v38  ;;  %v522_v47 = vadd.f32 %v518_v17, %v429_v22  ;;  %v962_v61 = vpop.eup %961  ;;  %v704_v38 = vmul.f32 %v700_v30, %v1444_v54 }
 0x142   :  { %967 = vpow2.f32 %v864_v43  ;;  %v685_v5 = vadd.f32 1.0, %v962_v61  ;;  %v866_v14 = vmul.f32 -1.442695, %v707_v25  ;;  %v527_v33 = vadd.f32 %v1454_v1, %v1460_v26 }
 0x143   :  { %969 = vpow2.f32 %v865_v45  ;;  %v863_v62 = vmul.f32 -1.442695, %v522_v47  ;;  %v532_v61 = vadd.f32 %v1462_v27, %v1469_v42 }
 0x144   :  { %971 = vtanh.f32 %v530_v51  ;;  %v708_v47 = vadd.f32 %v704_v38, %v527_v33 }
 0x145   :  { %v964_v13 = vpop.eup %963 }
 0x146   :  { %v686_v20 = vadd.f32 1.0, %v964_v13  ;;  %v122_v13 = vld [vmem:[#allocation3] sm:$0xff] }
 0x14b   :  { %v966_v15 = vpop.eup %965 }
 0x14c   :  { %v968_v29 = vpop.eup %967  ;;  %v687_v31 = vadd.f32 1.0, %v966_v15 }
 0x14d   :  { %v970_v32 = vpop.eup %969 }
 0x14e   :  { %v569_v41 = vpop.permute.xlu0 %568  ;;  %v1481_v35 = vpop.eup %971 }
 0x14f   :  { %v586_v44 = vadd.f32 %v569_v41, %v562_v39  ;;  %v531_v41 = vadd.f32 %v1469_v42, %v1464_v28  ;;  %v722_v42 = vadd.f32 1.0, %v970_v32  ;;  %v123_v32 = vld [vmem:[#allocation3 + $0x8] sm:$0xff] }
 0x151   :  { %v591_v49 = vadd.f32 %v590_v40, %v586_v44 }
 0x152   :  { %v579_v55 = vpop.permute.xlu0 %578  ;;  %v574_v57 = vpop.permute.xlu1 %573 }
 0x153   :  { %v852_v56 = vmul.f32 -1.442695, %v591_v49  ;;  %v588_v58 = vadd.f32 %v579_v55, %v564_v50  ;;  %v587_v63 = vadd.f32 %v574_v57, %v563_v53 }
 0x155   :  { %v593_v0 = vadd.f32 %v590_v40, %v588_v58  ;;  %973 = vpow2.f32 %v852_v56  ;;  %v592_v2 = vadd.f32 %v590_v40, %v587_v63  ;;  %v867_v56 = vmul.f32 -1.442695, %v708_v47 }
 0x156   :  { %v584_v7 = vpop.permute.xlu1 %583  ;;  %975 = vtanh.f32 %v529_v60 }
 0x157   :  { %v854_v6 = vmul.f32 -1.442695, %v593_v0  ;;  %v626_v9 = vpop.permute.xlu0 %625  ;;  %977 = vpow2.f32 %v863_v62  ;;  %v853_v10 = vmul.f32 -1.442695, %v592_v2  ;;  %v589_v11 = vadd.f32 %v584_v7, %v565_v3 }
 0x158   :  { %v640_v12 = vadd.f32 %v626_v9, %v620_v4 }
 0x159   :  { %979 = vpow2.f32 %v854_v6  ;;  %v594_v16 = vadd.f32 %v590_v40, %v589_v11  ;;  %v721_v6 = vadd.f32 1.0, %v968_v29 }
 0x15a   :  { %981 = vpow2.f32 %v853_v10  ;;  %v645_v17 = vadd.f32 %v644_v8, %v640_v12 }
 0x15b   :  { %983 = vrcp.f32 %v685_v5  ;;  %v638_v19 = vpop.permute.xlu0 %637  ;;  %v855_v21 = vmul.f32 -1.442695, %v594_v16  ;;  %v630_v23 = vpop.permute.xlu1 %629 }
 0x15c   :  { %v856_v22 = vmul.f32 -1.442695, %v645_v17  ;;  %v643_v24 = vadd.f32 %v638_v19, %v623_v18  ;;  %985 = vpow2.f32 %v866_v14  ;;  %v641_v25 = vadd.f32 %v630_v23, %v621_v46 }
 0x15d   :  { %987 = vpow2.f32 %v855_v21 }
 0x15e   :  { %v648_v34 = vadd.f32 %v644_v8, %v643_v24  ;;  %989 = vpow2.f32 %v856_v22  ;;  %v646_v52 = vadd.f32 %v644_v8, %v641_v25 }
 0x15f   :  { %v974_v37 = vpop.eup %973  ;;  %991 = vrcp.f32 %v686_v20  ;;  %v634_v40 = vpop.permute.xlu1 %633 }
 0x160   :  { %v859_v39 = vmul.f32 -1.442695, %v648_v34  ;;  %v1487_v43 = vpop.eup %975  ;;  %993 = vrcp.f32 %v687_v31  ;;  %v607_v1 = vadd.f32 1.0, %v974_v37  ;;  %v857_v26 = vmul.f32 -1.442695, %v646_v52  ;;  %v124_v31 = vld [vmem:[#allocation3 + $0x10] sm:$0xff] }
 0x161   :  { %v642_v44 = vadd.f32 %v634_v40, %v622_v36  ;;  %v978_v45 = vpop.eup %977 }
 0x162   :  { %995 = vpow2.f32 %v859_v39  ;;  %v688_v53 = vadd.f32 1.0, %v978_v45 }
 0x163   :  { %v980_v49 = vpop.eup %979  ;;  %997 = vrcp.f32 %v607_v1  ;;  %v647_v48 = vadd.f32 %v644_v8, %v642_v44 }
 0x164   :  { %v982_v50 = vpop.eup %981  ;;  %v609_v54 = vadd.f32 1.0, %v980_v49  ;;  %999 = vpow2.f32 %v857_v26 }
 0x165   :  { %v1489_v51 = vpop.eup %983  ;;  %v608_v55 = vadd.f32 1.0, %v982_v50  ;;  %v858_v28 = vmul.f32 -1.442695, %v647_v48  ;;  %1001 = vtanh.f32 %v531_v41  ;;  %v125_v48 = vld [vmem:[#allocation3 + $0x18] sm:$0xff] }
 0x166   :  { %1003 = vrcp.f32 %v609_v54  ;;  %v986_v57 = vpop.eup %985  ;;  %v757_v18 = vsub.f32 1.0, %v1489_v51 }
 0x167   :  { %1005 = vrcp.f32 %v608_v55  ;;  %v988_v58 = vpop.eup %987  ;;  %v723_v19 = vadd.f32 1.0, %v986_v57 }
 0x168   :  { %1007 = vpow2.f32 %v858_v28  ;;  %v990_v59 = vpop.eup %989  ;;  %v610_v60 = vadd.f32 1.0, %v988_v58  ;;  %v761_v40 = vmul.f32 %v757_v18, %v122_v13 }
 0x169   :  { %1009 = vrcp.f32 %v688_v53  ;;  %v1493_v62 = vpop.eup %991  ;;  %v661_v63 = vadd.f32 1.0, %v990_v59 }
 0x16a   :  { %1011 = vpow2.f32 %v867_v56  ;;  %v1495_v0 = vpop.eup %993  ;;  %v758_v50 = vsub.f32 1.0, %v1493_v62 }
 0x16b   :  { %1013 = vrcp.f32 %v610_v60 }
 0x16c   :  { %v996_v2 = vpop.eup %995  ;;  %1015 = vrcp.f32 %v661_v63  ;;  %v762_v60 = vmul.f32 %v758_v50, %v123_v32  ;;  %v759_v63 = vsub.f32 1.0, %v1495_v0 }
 0x16d   :  { %v998_v3 = vpop.eup %997  ;;  %v664_v4 = vadd.f32 1.0, %v996_v2  ;;  %1017 = vtanh.f32 %v532_v61 }
 0x16e   :  { %v1000_v5 = vpop.eup %999  ;;  %v737_v7 = vmul.f32 %v998_v3, %v1489_v51 }
 0x16f   :  { %v1498_v8 = vpop.eup %1001  ;;  %v662_v9 = vadd.f32 1.0, %v1000_v5  ;;  %1019 = vrcp.f32 %v664_v4 }
 0x170   :  { %v1004_v27 = vpop.eup %1003  ;;  %v741_v10 = vsub.f32 1.0, %v737_v7  ;;  %v749_v11 = vmul.f32 %v1487_v43, %v737_v7 }
 0x171   :  { %v1006_v12 = vpop.eup %1005  ;;  %1021 = vrcp.f32 %v662_v9  ;;  %v739_v14 = vmul.f32 %v1004_v27, %v1495_v0 }
 0x172   :  { %v1008_v15 = vpop.eup %1007  ;;  %1023 = vrcp.f32 %v721_v6  ;;  %v738_v16 = vmul.f32 %v1006_v12, %v1493_v62  ;;  %v745_v17 = vmul.f32 %v741_v10, %v122_v13 }
 0x173   :  { %v1010_v46 = vpop.eup %1009  ;;  %v663_v20 = vadd.f32 1.0, %v1008_v15  ;;  %v743_v21 = vsub.f32 1.0, %v739_v14  ;;  %v751_v22 = vmul.f32 %v1498_v8, %v739_v14  ;;  %1025 = vrcp.f32 %v722_v42 }
 0x174   :  { %v1012_v23 = vpop.eup %1011  ;;  %v742_v24 = vsub.f32 1.0, %v738_v16  ;;  %v750_v29 = vmul.f32 %v1481_v35, %v738_v16  ;;  %v753_v30 = vadd.f32 %v749_v11, %v745_v17  ;;  %v760_v44 = vsub.f32 1.0, %v1010_v46 }
 0x175   :  { %v1014_v25 = vpop.eup %1013  ;;  %1027 = vrcp.f32 %v663_v20  ;;  %v747_v33 = vmul.f32 %v743_v21, %v124_v31  ;;  %v724_v47 = vadd.f32 1.0, %v1012_v23 }
 0x176   :  { %v1016_v34 = vpop.eup %1015  ;;  %v746_v52 = vmul.f32 %v742_v24, %v123_v32  ;;  %1029 = vtanh.f32 %v753_v30  ;;  %v740_v36 = vmul.f32 %v1014_v25, %v1010_v46  ;;  %v764_v59 = vmul.f32 %v760_v44, %v125_v48 }
 0x177   :  { %v1018_v37 = vpop.eup %1017  ;;  %1031 = vrcp.f32 %v723_v19  ;;  %v765_v38 = vmul.f32 %v1016_v34, %v1489_v51  ;;  %v755_v39 = vadd.f32 %v751_v22, %v747_v33 }
 0x178   :  { %v754_v41 = vadd.f32 %v750_v29, %v746_v52  ;;  %v744_v1 = vsub.f32 1.0, %v740_v36  ;;  %v752_v26 = vmul.f32 %v1018_v37, %v740_v36 }
 0x179   :  { %v1020_v45 = vpop.eup %1019  ;;  %v769_v49 = vmul.f32 %v1487_v43, %v765_v38  ;;  %1033 = vtanh.f32 %v755_v39 }
 0x17a   :  { %1035 = vtanh.f32 %v754_v41  ;;  %v748_v54 = vmul.f32 %v744_v1, %v125_v48  ;;  %v768_v53 = vmul.f32 %v1020_v45, %v1010_v46 }
 0x17b   :  { %v1022_v55 = vpop.eup %1021  ;;  %v773_v28 = vadd.f32 %v769_v49, %v761_v40  ;;  %1037 = vrcp.f32 %v724_v47 }
 0x17c   :  { %v1024_v51 = vpop.eup %1023  ;;  %v766_v56 = vmul.f32 %v1022_v55, %v1493_v62  ;;  %v756_v57 = vadd.f32 %v752_v26, %v748_v54  ;;  %v772_v58 = vmul.f32 %v1018_v37, %v768_v53 }
 0x17d   :  { %789 = vst.msk [vmem:[#allocation13] sm:$0xff] %vm97_vm0, %v773_v28  ;;  %797 = vst.msk [vmem:[#allocation3] sm:$0xff] %vm97_vm0, %v773_v28  ;;  %v1026_v43 = vpop.eup %1025 }
 0x17e   :  { %v770_v61 = vmul.f32 %v1481_v35, %v766_v56  ;;  %1039 = vtanh.f32 %v756_v57  ;;  %v776_v2 = vadd.f32 %v772_v58, %v764_v59  ;;  %v763_v35 = vmul.f32 %v759_v63, %v124_v31 }
 0x17f   :  { %v1028_v3 = vpop.eup %1027 }
 0x180   :  { %v1030_v4 = vpop.eup %1029  ;;  %v767_v62 = vmul.f32 %v1028_v3, %v1495_v0  ;;  %v774_v5 = vadd.f32 %v770_v61, %v762_v60  ;;  %792 = vst.msk [vmem:[#allocation13 + $0x18] sm:$0xff] %vm97_vm0, %v776_v2  ;;  %800 = vst.msk [vmem:[#allocation3 + $0x18] sm:$0xff] %vm97_vm0, %v776_v2 }
 0x181   :  { %v1032_v6 = vpop.eup %1031  ;;  %v781_v7 = vmul.f32 %v1030_v4, %v1024_v51 }
 0x182   :  { %v771_v9 = vmul.f32 %v1498_v8, %v767_v62  ;;  %790 = vst.msk [vmem:[#allocation13 + $0x8] sm:$0xff] %vm97_vm0, %v774_v5  ;;  %798 = vst.msk [vmem:[#allocation3 + $0x8] sm:$0xff] %vm97_vm0, %v774_v5 }
 0x183   :  { %v1034_v27 = vpop.eup %1033  ;;  %785 = vst.msk [vmem:[#allocation12] sm:$0xff] %vm97_vm0, %v781_v7  ;;  %793 = vst.msk [vmem:[#allocation2] sm:$0xff] %vm97_vm0, %v781_v7 }
 0x184   :  { %v1036_v0 = vpop.eup %1035  ;;  %v783_v42 = vmul.f32 %v1034_v27, %v1032_v6  ;;  %v775_v10 = vadd.f32 %v771_v9, %v763_v35 }
 0x185   :  { %v782_v11 = vmul.f32 %v1036_v0, %v1026_v43  ;;  %v1038_v8 = vpop.eup %1037 }
 0x186   :  { %787 = vst.msk [vmem:[#allocation12 + $0x10] sm:$0xff] %vm97_vm0, %v783_v42  ;;  %795 = vst.msk [vmem:[#allocation2 + $0x10] sm:$0xff] %vm97_vm0, %v783_v42 }
 0x187   :  { %791 = vst.msk [vmem:[#allocation13 + $0x10] sm:$0xff] %vm97_vm0, %v775_v10  ;;  %799 = vst.msk [vmem:[#allocation3 + $0x10] sm:$0xff] %vm97_vm0, %v775_v10 }
 0x188   :  { %786 = vst.msk [vmem:[#allocation12 + $0x8] sm:$0xff] %vm97_vm0, %v782_v11  ;;  %794 = vst.msk [vmem:[#allocation2 + $0x8] sm:$0xff] %vm97_vm0, %v782_v11 }
 0x189   :  { %1140 = shalt.err (!%p1137_p8)
}
 0x18a   :  { %s1141_s14 = scalar_lea.hbm %s1570_s10, 512 }
 0x18b   :  { %p1142_p9 = scmp.ne.s32.totalorder %s1570_s10, %s1141_s14  ;;  %p1145_p10 = scmp.lt.u32.totalorder %s1141_s14, %s1570_s10 }
 0x18d   :  { %p1147_p11 = pnand %p1145_p10, %p1142_p9 }
 0x18f   :  { %1150 = shalt.err (!%p1147_p11)
}
 0x190   :  { %824 = dma.vmem_to_hbm [thread:$0]  %s819_s12, 512, %s1570_s10, [#allocation14], %s1185_s25, %s1185_s25, %s1186_s26   ;;  %v1040_v12 = vpop.eup %1039 }
 0x191   :  { %v784_v13 = vmul.f32 %v1040_v12, %v1038_v8  ;;  %s1151_s23 = scalar_lea.vmem %s807_s15, 512  ;;  %p1156_p13 = scmp.lt.s32.totalorder %s807_s15, %s807_s15 }
 0x192   :  { %p1152_p12 = scmp.ne.s32.totalorder %s807_s15, %s1151_s23  ;;  %p1157_p0 = scmp.lt.s32.totalorder %s1151_s23, %s1151_s23 }
 0x193   :  { %788 = vst.msk [vmem:[#allocation12 + $0x18] sm:$0xff] %vm97_vm0, %v784_v13  ;;  %796 = vst.msk [vmem:[#allocation2 + $0x18] sm:$0xff] %vm97_vm0, %v784_v13 }
 0x194   :  { %p1158_p1 = por %p1157_p0, %p1156_p13 }
 0x196   :  { %p1159_p2 = pnand %p1158_p1, %p1152_p12 }
 0x198   :  { %1162 = shalt.err (!%p1159_p2)
}
 0x199   :  { %s1163_s27 = scalar_lea.hbm %s1569_s9, 512 }
 0x19a   :  { %p1164_p3 = scmp.ne.s32.totalorder %s1569_s9, %s1163_s27  ;;  %p1167_p4 = scmp.lt.u32.totalorder %s1163_s27, %s1569_s9 }
 0x19c   :  { %p1169_p5 = pnand %p1167_p4, %p1164_p3 }
 0x19e   :  { %1172 = shalt.err (!%p1169_p5)
}
 0x19f   :  { %812 = dma.vmem_to_hbm [thread:$0]  %s807_s15, 512, %s1569_s9, [#allocation6], %s1185_s25, %s1185_s25, %s1186_s26  }
 0x1a0   :  { %1179 = dma.done.wait [#allocation6], 512  }
 0x1a1   :  { %1180 = vsyncadd [#allocation6], 4294966784 }
 0x1a2   :  { %1181 = dma.done.wait [#allocation14], 512  }
 0x1a3   :  { %1182 = vsyncadd [#allocation14], 4294966784 }
 0x1a4   :  { %831 = vsyncpa [#allocation5], 1 }
 0x1a5   :  { %832 = vsyncpa [#allocation8], 1 }
 0x1a6   :  { %833 = vsyncpa [#allocation11], 1 }
 0x1a7   :  { %834 = vsyncpa [#allocation6], 1 }
 0x1a8   :  { %835 = vsyncpa [#allocation14], 1 }

</bundles_post_ra>
